<compile_context>
chip_gen: v6e
topology: v6e:2x2x1
jax: 0.10.0
libtpu: 0.0.40
codegen_flags: <defaults>
</compile_context>

<pallas_src>
import functools

import jax
import jax.numpy as jnp
from jax import lax
from jax.experimental import pallas as pl
from jax.experimental.pallas import tpu as pltpu


def _round_up(a, b):
    return (a + b - 1) // b * b


def _sublane_align(dtype):
    # Native sublane tile rows: f32 -> 8, bf16 -> 16, int8/bool -> 32.
    return max(8, 32 // jnp.dtype(dtype).itemsize)


def _vmem_limit_bytes():
    cap = 64 << 20  # conservative default (v7x-sized) if query unavailable
    try:
        cap = int(pltpu.get_tpu_info().vmem_capacity_bytes)
    except Exception:
        pass
    # Request ~3/4 of physical VMEM from Mosaic: 96 MiB on v5e/v6e (128 MiB),
    # 48 MiB on v7x (64 MiB) -- leaves runtime headroom.
    return (cap // 4) * 3


def _bce_partial_kernel(x_ref, t_ref, p_ref, *, tm, tn, m_total, n_total,
                        ragged_m, ragged_n):
    """Per-tile stable BCE-with-logits, folded to an (8, 128) partial sum."""
    x = x_ref[...].astype(jnp.float32)
    t = t_ref[...].astype(jnp.float32)

    # Stable BCE with logits: max(x,0) - x*t + log1p(exp(-|x|)).
    loss = jnp.maximum(x, 0.0) - x * t + jnp.log1p(jnp.exp(-jnp.abs(x)))

    def fold_and_store(val):
        # Sublane-group fold: (tm, tn) -> (tm//8, 8, tn) -> (8, tn).
        # Layout-trivial reshape (only the leading sublane-group axis splits),
        # so this is pure VPU vreg adds.
        sub = jnp.sum(val.reshape(tm // 8, 8, tn), axis=0)
        # Lane fold: (8, tn) -> (8, 128) via a tree of 128-aligned static
        # slice adds (whole vregs, pure VPU, no XLU).
        chunks = [sub[:, k * 128:(k + 1) * 128] for k in range(tn // 128)]
        while len(chunks) > 1:
            nxt = [a + b for a, b in zip(chunks[::2], chunks[1::2])]
            if len(chunks) % 2:
                nxt.append(chunks[-1])
            chunks = nxt
        p_ref[...] = chunks[0]

    if not (ragged_m or ragged_n):
        fold_and_store(loss)
        return

    # Only edge blocks pay for the mask.
    conds = []
    if ragged_m:
        conds.append(pl.program_id(0) == pl.num_programs(0) - 1)
    if ragged_n:
        conds.append(pl.program_id(1) == pl.num_programs(1) - 1)
    is_edge = conds[0]
    for c in conds[1:]:
        is_edge = jnp.logical_or(is_edge, c)

    @pl.when(is_edge)
    def _():
        masked = loss
        if ragged_m:
            row_ok = (pl.program_id(0) * tm
                      + lax.broadcasted_iota(jnp.int32, (tm, 1), 0)) < m_total
            masked = jnp.where(row_ok, masked, 0.0)
        if ragged_n:
            col_ok = (pl.program_id(1) * tn
                      + lax.broadcasted_iota(jnp.int32, (1, tn), 1)) < n_total
            masked = jnp.where(col_ok, masked, 0.0)
        fold_and_store(masked)

    @pl.when(jnp.logical_not(is_edge))
    def _():
        fold_and_store(loss)


def multi_label_loss(x, target):
    """Mean BCE-with-logits over all elements (== MultiLabelLoss.forward)."""
    assert x.shape == target.shape, (x.shape, target.shape)

    # 'mean' reduction is over ALL elements; flatten to 2-D, labels on lanes.
    x2 = x.reshape(1, -1) if x.ndim <= 1 else x.reshape(-1, x.shape[-1])
    t2 = target.reshape(x2.shape)
    M, N = x2.shape

    m_align = max(_sublane_align(x2.dtype), _sublane_align(t2.dtype))
    if M < m_align:
        # Tiny batch: ship both streams as f32 so an 8-row-aligned tile is legal.
        x2 = x2.astype(jnp.float32)
        t2 = t2.astype(jnp.float32)
        m_align = 8

    # --- VMEM-budgeted tile sizing (generation-aware) ------------------------
    vmem_limit = _vmem_limit_bytes()
    # Per-element cost of a grid step: 2x double-buffered input tiles plus
    # ~3 full-tile f32 intermediates for the loss chain (Mosaic scratch).
    bytes_per_elem = 2 * (x2.dtype.itemsize + t2.dtype.itemsize) + 3 * 4
    tile_elems = max(8 * 128, (vmem_limit * 4 // 5) // bytes_per_elem)

    n_pad = _round_up(N, 128)
    # Grow lanes first: full padded N per block whenever it fits the budget
    # (grid[1]==1 -> contiguous row DMA, no column mask).  Lane cap keeps the
    # unrolled lane-fold small.
    lane_cap = 32768
    tn_budget = max(128, min(lane_cap, (tile_elems // m_align) // 128 * 128))
    tn = min(n_pad, tn_budget)

    tm_cap = max(m_align, (tile_elems // tn) // m_align * m_align)
    tm = min(_round_up(M, m_align), tm_cap)

    grid_m = pl.cdiv(M, tm)
    grid_n = pl.cdiv(N, tn)
    # v7x has 2 TensorCores: expose >=2 parallel blocks if everything fit in
    # one tile (costs one extra ~0.35us step on single-TC chips; negligible).
    if (grid_m == 1 and grid_n == 1 and tm >= 2 * m_align
            and (tm // 2) % m_align == 0 and M > tm // 2):
        tm //= 2
        grid_m = pl.cdiv(M, tm)

    grid = (grid_m, grid_n)
    ragged_m = (M % tm) != 0
    ragged_n = (N % tn) != 0

    kernel = functools.partial(
        _bce_partial_kernel, tm=tm, tn=tn, m_total=M, n_total=N,
        ragged_m=ragged_m, ragged_n=ragged_n)

    # Each grid step writes its own (8, 128) partial-sum block => no cross-step
    # dependency, both axes 'parallel'; the tiny final reduction runs in JAX.
    partials = pl.pallas_call(
        kernel,
        out_shape=jax.ShapeDtypeStruct((grid_m * 8, grid_n * 128), jnp.float32),
        grid_spec=pltpu.PrefetchScalarGridSpec(
            num_scalar_prefetch=0,
            grid=grid,
            in_specs=[
                pl.BlockSpec((tm, tn), lambda i, j: (i, j)),
                pl.BlockSpec((tm, tn), lambda i, j: (i, j)),
            ],
            out_specs=pl.BlockSpec((8, 128), lambda i, j: (i, j)),
        ),
        compiler_params=pltpu.CompilerParams(
            dimension_semantics=("parallel", "parallel"),
            vmem_limit_bytes=int(vmem_limit)),
    )(x2, t2)

    return jnp.sum(partials) / jnp.float32(M * N)


if __name__ == "__main__":
    key = jax.random.PRNGKey(0)
    kx, kt = jax.random.split(key)

    batch, num_labels = 16, 128
    x = jax.random.normal(kx, (batch, num_labels), dtype=jnp.float32)
    # 0/1 multi-hot targets shipped as bf16 (exact for 0/1; halves one HBM stream).
    target = jax.random.bernoulli(kt, 0.3, (batch, num_labels)).astype(jnp.bfloat16)

    loss = multi_label_loss(x, target)
    loss = jax.block_until_ready(loss)

    # Pure-JAX reference (f32) for sanity.
    tf = target.astype(jnp.float32)
    ref = jnp.mean(jnp.maximum(x, 0.0) - x * tf + jnp.log1p(jnp.exp(-jnp.abs(x))))
    assert jnp.allclose(loss, ref, rtol=1e-5, atol=1e-5), (loss, ref)

    print("KERNEL_OK")
</pallas_src>

<mosaic_0001>
module attributes {stable_mosaic.version = 11 : i64} {
  func.func @_bce_partial_kernel(%arg0: i32, %arg1: i32, %arg2: memref<16x128xf32, #tpu.memory_space<vmem>>, %arg3: memref<16x128xbf16, #tpu.memory_space<vmem>>, %arg4: memref<8x128xf32, #tpu.memory_space<vmem>>) attributes {dimension_semantics = [#tpu.dimension_semantics<parallel>, #tpu.dimension_semantics<parallel>], iteration_bounds = array<i64: 1, 1>, scalar_prefetch = 0 : i64, scratch_operands = 0 : i64, tpu.core_type = #tpu.core_type<tc>, window_params = [{transform_indices = @transform_0, window_bounds = array<i64: 16, 128>}, {transform_indices = @transform_1, window_bounds = array<i64: 16, 128>}, {transform_indices = @transform_2, window_bounds = array<i64: 8, 128>}]} {
    %c0 = arith.constant 0 : index
    %c0_0 = arith.constant 0 : index
    %0 = vector.load %arg2[%c0, %c0_0] : memref<16x128xf32, #tpu.memory_space<vmem>>, vector<16x128xf32>
    %c0_1 = arith.constant 0 : index
    %c0_2 = arith.constant 0 : index
    %1 = vector.load %arg3[%c0_1, %c0_2] : memref<16x128xbf16, #tpu.memory_space<vmem>>, vector<16x128xbf16>
    %2 = arith.extf %1 : vector<16x128xbf16> to vector<16x128xf32>
    %cst = arith.constant 0.000000e+00 : f32
    %3 = vector.broadcast %cst : f32 to vector<16x128xf32>
    %4 = arith.maximumf %0, %3 : vector<16x128xf32>
    %5 = arith.mulf %0, %2 : vector<16x128xf32>
    %6 = arith.subf %4, %5 : vector<16x128xf32>
    %7 = math.absf %0 : vector<16x128xf32>
    %cst_3 = arith.constant 0.000000e+00 : f32
    %8 = vector.broadcast %cst_3 : f32 to vector<16x128xf32>
    %9 = arith.subf %8, %7 : vector<16x128xf32>
    %10 = math.exp %9 : vector<16x128xf32>
    %11 = math.log1p %10 : vector<16x128xf32>
    %12 = arith.addf %6, %11 : vector<16x128xf32>
    %13 = vector.shape_cast %12 : vector<16x128xf32> to vector<2x8x128xf32>
    %cst_4 = arith.constant dense<0.000000e+00> : vector<8x128xf32>
    %14 = vector.multi_reduction <add>, %13, %cst_4 [0] : vector<2x8x128xf32> to vector<8x128xf32>
    %c0_5 = arith.constant 0 : index
    %c0_6 = arith.constant 0 : index
    %15 = vector.load %arg4[%c0_5, %c0_6] : memref<8x128xf32, #tpu.memory_space<vmem>>, vector<8x128xf32>
    tpu.vector_store %arg4[%c0_5, %c0_6], %14 {strides = array<i32>} : memref<8x128xf32, #tpu.memory_space<vmem>>, vector<8x128xf32>,
    return
  }
  func.func @transform_0(%arg0: i32, %arg1: i32) -> (i32, i32) {
    %c0_i32 = arith.constant 0 : i32
    return %arg0, %arg1 : i32, i32
  }
  func.func @transform_1(%arg0: i32, %arg1: i32) -> (i32, i32) {
    %c0_i32 = arith.constant 0 : i32
    return %arg0, %arg1 : i32, i32
  }
  func.func @transform_2(%arg0: i32, %arg1: i32) -> (i32, i32) {
    %c0_i32 = arith.constant 0 : i32
    return %arg0, %arg1 : i32, i32
  }
}

</mosaic_0001>

<bundles_post_ra>
// kernel: tpu_custom_call.1
= control target key start
LH: loop header
LB: loop body
LE: loop exit
PB: predicated region body
PF: predicated region fallthrough
CT: control target
= control target key end

     0   :  { %7 = vsyncpa [#allocation3], 0  ;;  %s214_s0 = inlined_call_operand.hbm [shape: f32[16,128], index: 0, kind: input, shape index: {}]   ;;  %s215_s1 = inlined_call_operand.hbm [shape: bf16[16,128], index: 1, kind: input, shape index: {}]   ;;  %s216_s2 = inlined_call_operand.hbm [shape: f32[8,128], index: 2, kind: output, shape index: {}]  }
   0x1   :  { %8 = vsyncpa [#allocation6], 0 }
   0x2   :  { %9 = vsyncpa [#allocation4], 0  ;;  %s183_s9 = smov [#allocation2]  }
   0x3   :  { %s15_s10 = sshll.u32 %s183_s9, 4  ;;  %s16_s10 = int_to_ptr.vmem [resolvable:$true] %s15_s10 }
   0x4   :  { %s125_s11 = scalar_lea.vmem %s16_s10, 256  ;;  %p130_p1 = scmp.lt.s32.totalorder %s16_s10, %s16_s10 }
   0x5   :  { %p126_p0 = scmp.ne.s32.totalorder %s16_s10, %s125_s11  ;;  %p131_p2 = scmp.lt.s32.totalorder %s125_s11, %s125_s11 }
   0x7   :  { %p132_p3 = por %p131_p2, %p130_p1 }
   0x9   :  { %p133_p4 = pnand %p132_p3, %p126_p0 }
   0xb   :  { %136 = shalt.err (!%p133_p4)
}
   0xc   :  { %s184_s12 = smov 128   ;;  %s185_s13 = smov 8  }
   0xd   :  { %21 = dma.hbm_to_vmem [thread:$0]  %s214_s0, 256, %s16_s10, [#allocation3], %s184_s12, %s184_s12, %s185_s13  }
   0xe   :  { %s186_s16 = smov [#allocation5]  }
   0xf   :  { %s27_s17 = sshll.u32 %s186_s16, 4  ;;  %s28_s17 = int_to_ptr.vmem [resolvable:$true] %s27_s17 }
  0x10   :  { %s145_s18 = scalar_lea.vmem %s28_s17, 128  ;;  %p150_p6 = scmp.lt.s32.totalorder %s28_s17, %s28_s17 }
  0x11   :  { %p146_p5 = scmp.ne.s32.totalorder %s28_s17, %s145_s18  ;;  %p151_p7 = scmp.lt.s32.totalorder %s145_s18, %s145_s18 }
  0x13   :  { %p152_p8 = por %p151_p7, %p150_p6 }
  0x15   :  { %p153_p9 = pnand %p152_p8, %p146_p5 }
  0x17   :  { %156 = shalt.err (!%p153_p9)
}
  0x18   :  { %s187_s19 = smov 64   ;;  %s188_s20 = smov 4  }
  0x19   :  { %33 = dma.hbm_to_vmem [thread:$0]  %s215_s1, 128, %s28_s17, [#allocation6], %s187_s19, %s187_s19, %s188_s20  }
  0x1a   :  { %177 = dma.done.wait [#allocation3], 256  }
  0x1b   :  { %178 = vsyncadd [#allocation3], 4294967040 }
  0x1c   :  { %179 = dma.done.wait [#allocation6], 128  }
  0x1d   :  { %180 = vsyncadd [#allocation6], 4294967168  ;;  %v40_v0 = vld [vmem:[#allocation2] sm:$0xff]  ;;  %v41_v1 = vld [vmem:[#allocation2 + $0x8] sm:$0xff]  ;;  %s189_s0 = smov [#allocation7]  }
  0x1e   :  { %v52_v2 = vand.u32 2147483647, %v40_v0  ;;  %v53_v3 = vand.u32 2147483647, %v41_v1  ;;  %v99_v12 = vld [vmem:[#allocation5] sm:$0xff]   ;;  %v46_v18 = vmax.f32 %v40_v0, 0.0 }
  0x1f   :  { %v100_v14 = vunpack.c.l.bf16 %v99_v12  ;;  %v101_v16 = vunpack.c.h.bf16 %v99_v12  ;;  %v47_v22 = vmax.f32 %v41_v1, 0.0  ;;  %s88_s1 = sshll.u32 %s189_s0, 4  ;;  %s89_s1 = int_to_ptr.vmem [resolvable:$true] %s88_s1 }
  0x20   :  { %v54_v4 = vsub.f32 0.0, %v52_v2  ;;  %v55_v5 = vsub.f32 0.0, %v53_v3  ;;  %s157_s23 = scalar_lea.vmem %s89_s1, 128  ;;  %p162_p11 = scmp.lt.s32.totalorder %s89_s1, %s89_s1 }
  0x21   :  { %v48_v19 = vmul.f32 %v100_v14, %v40_v0  ;;  %v49_v23 = vmul.f32 %v101_v16, %v41_v1  ;;  %p158_p10 = scmp.ne.s32.totalorder %s89_s1, %s157_s23  ;;  %p163_p12 = scmp.lt.s32.totalorder %s157_s23, %s157_s23 }
  0x22   :  { %v56_v6 = vmul.f32 1.442695, %v54_v4  ;;  %v58_v7 = vmul.f32 1.442695, %v55_v5 }
  0x23   :  { %v50_v27 = vsub.f32 %v46_v18, %v48_v19  ;;  %v51_v30 = vsub.f32 %v47_v22, %v49_v23  ;;  %p164_p13 = por %p163_p12, %p162_p11 }
  0x24   :  { %109 = vpow2.f32 %v56_v6 }
  0x25   :  { %111 = vpow2.f32 %v58_v7  ;;  %p165_p0 = pnand %p164_p13, %p158_p10 }
  0x31   :  { %v110_v8 = vpop.eup %109 }
  0x32   :  { %v112_v9 = vpop.eup %111  ;;  %v60_v10 = vadd.f32 1.0, %v110_v8  ;;  %v63_v13 = vmul.f32 -0.5, %v110_v8  ;;  %v66_v20 = vand.u32 2147483647, %v110_v8 }
  0x33   :  { %v69_v11 = vadd.f32 1.0, %v112_v9  ;;  %v72_v15 = vmul.f32 -0.5, %v112_v9  ;;  %v75_v24 = vand.u32 2147483647, %v112_v9 }
  0x34   :  { %113 = vlog2.f32 %v60_v10  ;;  %v64_v17 = vadd.f32 1.0, %v63_v13  ;;  %vm67_vm0 = vcmp.lt.f32.partialorder %v66_v20, 0.0004427343 }
  0x35   :  { %115 = vlog2.f32 %v69_v11  ;;  %v73_v21 = vadd.f32 1.0, %v72_v15  ;;  %vm76_vm1 = vcmp.lt.f32.partialorder %v75_v24, 0.0004427343 }
  0x36   :  { %v65_v25 = vmul.f32 %v110_v8, %v64_v17 }
  0x37   :  { %v74_v28 = vmul.f32 %v112_v9, %v73_v21 }
  0x41   :  { %v114_v26 = vpop.eup %113 }
  0x42   :  { %v116_v29 = vpop.eup %115  ;;  %v62_v31 = vmul.f32 0.6931472, %v114_v26 }
  0x43   :  { %v71_v32 = vmul.f32 0.6931472, %v116_v29 }
  0x44   :  { %v68_v33 = vsel %vm67_vm0, %v65_v25, %v62_v31 }
  0x45   :  { %v77_v34 = vsel %vm76_vm1, %v74_v28, %v71_v32  ;;  %v78_v35 = vadd.f32 %v68_v33, %v50_v27 }
  0x46   :  { %v79_v36 = vadd.f32 %v77_v34, %v51_v30 }
  0x48   :  { %v80_v37 = vadd.f32 %v79_v36, %v78_v35 }
  0x4a   :  { %81 = vst [vmem:[#allocation7] sm:$0xff] %v80_v37 }
  0x4b   :  { %168 = shalt.err (!%p165_p0)
}
  0x4c   :  { %91 = dma.vmem_to_hbm [thread:$0]  %s89_s1, 128, %s216_s2, [#allocation4]  }
  0x4d   :  { %181 = dma.done.wait [#allocation4], 128  }
  0x4e   :  { %182 = vsyncadd [#allocation4], 4294967168 }
  0x4f   :  { %95 = vsyncpa [#allocation3], 1 }
  0x50   :  { %96 = vsyncpa [#allocation6], 1 }
  0x51   :  { %97 = vsyncpa [#allocation4], 1 }

</bundles_post_ra>
